<compile_context>
chip_gen: v6e
topology: v6e:2x2x1
jax: 0.10.0
libtpu: 0.0.40
codegen_flags: <defaults>
</compile_context>

<pallas_src>
import jax
import jax.numpy as jnp
from jax.experimental import pallas as pl
from jax.experimental.pallas import tpu as pltpu

LANE = 128      # pad all sub-128 feature dims up to a full lane width
TB_MAX = 1024   # max batch rows per grid step (f32/bf16 block ~2-4 MiB)


def _round_up(a, m):
    return ((a + m - 1) // m) * m


def fcnet_kernel(x_ref, w0_ref, w1_ref, w2_ref, wc_ref, bias_ref, out_ref):
    """Fused bn0 + (Linear->BN->ReLU)x3 + Linear; BN pre-folded into weights."""
    b0 = bias_ref[0:1, :]
    b1 = bias_ref[1:2, :]
    b2 = bias_ref[2:3, :]
    bc = bias_ref[3:4, :]

    # layer 0: bf16 activations / bf16 folded weight, f32 accumulation (MXU).
    h = jnp.dot(x_ref[...], w0_ref[...], preferred_element_type=jnp.float32)
    h = jnp.maximum(h + b0, 0.0)

    # layers 1/2: tiny resident 128x128 weights, f32 throughout.
    h = jnp.dot(h, w1_ref[...], preferred_element_type=jnp.float32)
    h = jnp.maximum(h + b1, 0.0)
    h = jnp.dot(h, w2_ref[...], preferred_element_type=jnp.float32)
    h = jnp.maximum(h + b2, 0.0)

    # classifier: output padded to 128 lanes -> unmasked lane-dense store.
    logits = jnp.dot(h, wc_ref[...], preferred_element_type=jnp.float32)
    out_ref[...] = (logits + bc).astype(out_ref.dtype)


def _bn_scale_shift(gamma, beta, mean, var, eps=1e-5):
    scale = gamma / jnp.sqrt(var + eps)
    shift = beta - mean * scale
    return scale, shift


def _pad2(a, rows, cols):
    return jnp.pad(a, ((0, rows - a.shape[0]), (0, cols - a.shape[1])))


def fold_params(params, eps=1e-5):
    """Fold every BN (eval mode) into the adjacent Linear and pad to 128 lanes."""
    bn0_s, bn0_b = _bn_scale_shift(*params["bn0"], eps)

    w0, g0, be0, m0, v0 = params["layers"][0]
    w1, g1, be1, m1, v1 = params["layers"][1]
    w2, g2, be2, m2, v2 = params["layers"][2]
    s0, b0 = _bn_scale_shift(g0, be0, m0, v0, eps)
    s1, b1 = _bn_scale_shift(g1, be1, m1, v1, eps)
    s2, b2 = _bn_scale_shift(g2, be2, m2, v2, eps)

    # bn0 (per input feature) folds into w0 rows; each layer BN folds into the
    # columns of its Linear plus a per-layer bias.
    w0_eff = bn0_s[:, None] * w0 * s0[None, :]
    b0_eff = (bn0_b @ w0) * s0 + b0
    w1_eff = w1 * s1[None, :]
    w2_eff = w2 * s2[None, :]
    wc, bc = params["wc"], params["bc"]

    d_in = w0.shape[0]
    w0_p = _pad2(w0_eff, d_in, LANE).astype(jnp.bfloat16)   # dominant stream in bf16
    w1_p = _pad2(w1_eff, LANE, LANE).astype(jnp.float32)
    w2_p = _pad2(w2_eff, LANE, LANE).astype(jnp.float32)
    wc_p = _pad2(wc, LANE, LANE).astype(jnp.float32)

    def pad1(v):
        return jnp.pad(v, (0, LANE - v.shape[0]))

    bias_pack = jnp.stack(
        [pad1(b0_eff), pad1(b1), pad1(b2), pad1(bc)], axis=0
    ).astype(jnp.float32)                                    # (4, LANE)

    return w0_p, w1_p, w2_p, wc_p, bias_pack


def fcnet_forward(x, params):
    """x: any shape with leading batch dim; flattened to (B, input_dim)."""
    B = x.shape[0]
    x_flat = x.reshape(B, -1)
    d_in = x_flat.shape[1]
    out_dim = params["wc"].shape[1]

    w0_p, w1_p, w2_p, wc_p, bias_pack = fold_params(params)

    # Batch tile: as large as possible up to TB_MAX, multiple of 16 (bf16 rows).
    if B <= TB_MAX:
        tb = _round_up(B, 16)
    else:
        tb = TB_MAX
    b_pad = _round_up(B, tb)
    x_p = jnp.pad(x_flat, ((0, b_pad - B), (0, 0))).astype(jnp.bfloat16)

    grid = (b_pad // tb,)

    def resident(shape):
        # Same block every iteration -> stays VMEM-resident, no re-DMA.
        return pl.BlockSpec(shape, lambda i: (0, 0))

    flops = 2 * b_pad * (d_in * LANE + 3 * LANE * LANE)
    bytes_accessed = (
        x_p.size * 2 + b_pad * LANE * 4 + w0_p.size * 2
        + (w1_p.size + w2_p.size + wc_p.size + bias_pack.size) * 4
    )

    out_padded = pl.pallas_call(
        fcnet_kernel,
        out_shape=jax.ShapeDtypeStruct((b_pad, LANE), jnp.float32),
        grid=grid,
        in_specs=[
            pl.BlockSpec((tb, d_in), lambda i: (i, 0)),   # x: streamed per tile
            resident((d_in, LANE)),                       # folded w0 (bf16)
            resident((LANE, LANE)),                       # folded w1
            resident((LANE, LANE)),                       # folded w2
            resident((LANE, LANE)),                       # classifier weight
            resident((4, LANE)),                          # packed per-layer biases
        ],
        out_specs=pl.BlockSpec((tb, LANE), lambda i: (i, 0)),
        compiler_params=pltpu.CompilerParams(
            dimension_semantics=("parallel",),
        ),
        cost_estimate=pl.CostEstimate(
            flops=flops, transcendentals=0, bytes_accessed=bytes_accessed),
    )(x_p, w0_p, w1_p, w2_p, wc_p, bias_pack)

    return out_padded[:B, :out_dim]


def make_params(key, input_dim, output_dim, hid_dims=(72, 36, 18)):
    """Deterministic synthetic module-style parameters (no checkpoint load)."""
    def bn(k, dim):
        k1, k2, k3, k4 = jax.random.split(k, 4)
        gamma = 1.0 + 0.1 * jax.random.normal(k1, (dim,), jnp.float32)
        beta = 0.1 * jax.random.normal(k2, (dim,), jnp.float32)
        mean = 0.1 * jax.random.normal(k3, (dim,), jnp.float32)
        var = jnp.abs(1.0 + 0.1 * jax.random.normal(k4, (dim,), jnp.float32))
        return gamma, beta, mean, var

    keys = jax.random.split(key, 8)
    params = {"bn0": bn(keys[0], input_dim)}

    dims_in = [input_dim] + list(hid_dims[:-1])
    layers = []
    for li, (din, dout) in enumerate(zip(dims_in, hid_dims)):
        kw, kb = jax.random.split(keys[1 + li])
        w = jax.random.normal(kw, (din, dout), jnp.float32) / jnp.sqrt(din)
        layers.append((w,) + bn(kb, dout))
    params["layers"] = layers

    kw, kb = jax.random.split(keys[5])
    params["wc"] = jax.random.normal(
        kw, (hid_dims[-1], output_dim), jnp.float32) / jnp.sqrt(hid_dims[-1])
    params["bc"] = 0.1 * jax.random.normal(kb, (output_dim,), jnp.float32)
    return params


def fcnet_reference(x, params, eps=1e-5):
    """Pure-JAX f32 reference of the same (eval-mode) forward pass."""
    h = x.reshape(x.shape[0], -1).astype(jnp.float32)
    s, b = _bn_scale_shift(*params["bn0"], eps)
    h = h * s + b
    for (w, gamma, beta, mean, var) in params["layers"]:
        s, b = _bn_scale_shift(gamma, beta, mean, var, eps)
        h = jnp.maximum((h @ w) * s + b, 0.0)
    return h @ params["wc"] + params["bc"]


if __name__ == "__main__":
    key = jax.random.PRNGKey(0)
    kx, kp = jax.random.split(key)

    # Input consistent with flatten(view): NCHW tensor, flattened to input_dim.
    B, C, H, W = 2, 4, 16, 16
    input_dim = C * H * W          # 1024
    output_dim = 10

    x = jax.random.normal(kx, (B, C, H, W), jnp.float32)
    params = make_params(kp, input_dim, output_dim)

    logits = jax.block_until_ready(fcnet_forward(x, params))
    ref = fcnet_reference(x, params)

    assert logits.shape == (B, output_dim)
    # bf16 x / w0 stream (f32 accumulation) -> tolerance loosened vs pure f32.
    assert jnp.allclose(logits, ref, atol=2e-2, rtol=2e-2), float(
        jnp.max(jnp.abs(logits - ref)))
    print("KERNEL_OK")
</pallas_src>

<mosaic_0001>
module attributes {stable_mosaic.version = 11 : i64} {
  func.func @fcnet_kernel(%arg0: i32, %arg1: memref<16x1024xbf16, #tpu.memory_space<vmem>>, %arg2: memref<1024x128xbf16, #tpu.memory_space<vmem>>, %arg3: memref<128x128xf32, #tpu.memory_space<vmem>>, %arg4: memref<128x128xf32, #tpu.memory_space<vmem>>, %arg5: memref<128x128xf32, #tpu.memory_space<vmem>>, %arg6: memref<4x128xf32, #tpu.memory_space<vmem>>, %arg7: memref<16x128xf32, #tpu.memory_space<vmem>>) attributes {dimension_semantics = [#tpu.dimension_semantics<parallel>], iteration_bounds = array<i64: 1>, scalar_prefetch = 0 : i64, scratch_operands = 0 : i64, tpu.core_type = #tpu.core_type<tc>, window_params = [{transform_indices = @transform_0, window_bounds = array<i64: 16, 1024>}, {pipeline_mode = #tpu.pipeline_mode<synchronous>, transform_indices = @transform_1, window_bounds = array<i64: 1024, 128>}, {pipeline_mode = #tpu.pipeline_mode<synchronous>, transform_indices = @transform_2, window_bounds = array<i64: 128, 128>}, {pipeline_mode = #tpu.pipeline_mode<synchronous>, transform_indices = @transform_3, window_bounds = array<i64: 128, 128>}, {pipeline_mode = #tpu.pipeline_mode<synchronous>, transform_indices = @transform_4, window_bounds = array<i64: 128, 128>}, {pipeline_mode = #tpu.pipeline_mode<synchronous>, transform_indices = @transform_5, window_bounds = array<i64: 4, 128>}, {transform_indices = @transform_6, window_bounds = array<i64: 16, 128>}]} {
    %c0 = arith.constant 0 : index
    %c0_0 = arith.constant 0 : index
    %0 = vector.load %arg6[%c0, %c0_0] : memref<4x128xf32, #tpu.memory_space<vmem>>, vector<1x128xf32>
    %c1 = arith.constant 1 : index
    %c0_1 = arith.constant 0 : index
    %1 = vector.load %arg6[%c1, %c0_1] : memref<4x128xf32, #tpu.memory_space<vmem>>, vector<1x128xf32>
    %c2 = arith.constant 2 : index
    %c0_2 = arith.constant 0 : index
    %2 = vector.load %arg6[%c2, %c0_2] : memref<4x128xf32, #tpu.memory_space<vmem>>, vector<1x128xf32>
    %c3 = arith.constant 3 : index
    %c0_3 = arith.constant 0 : index
    %3 = vector.load %arg6[%c3, %c0_3] : memref<4x128xf32, #tpu.memory_space<vmem>>, vector<1x128xf32>
    %c0_4 = arith.constant 0 : index
    %c0_5 = arith.constant 0 : index
    %4 = vector.load %arg1[%c0_4, %c0_5] : memref<16x1024xbf16, #tpu.memory_space<vmem>>, vector<16x1024xbf16>
    %c0_6 = arith.constant 0 : index
    %c0_7 = arith.constant 0 : index
    %5 = vector.load %arg2[%c0_6, %c0_7] : memref<1024x128xbf16, #tpu.memory_space<vmem>>, vector<1024x128xbf16>
    %cst = arith.constant dense<0.000000e+00> : vector<16x128xf32>
    %6 = tpu.matmul %4, %5, %cst {dimension_numbers = #tpu.dot_dimension_numbers<[1], [0], [0], [1], [0, 0, 1, 1], [], []>} : vector<16x1024xbf16>, vector<1024x128xbf16>, vector<16x128xf32> -> vector<16x128xf32>
    %7 = vector.broadcast %0 : vector<1x128xf32> to vector<16x128xf32>
    %8 = arith.addf %6, %7 : vector<16x128xf32>
    %cst_8 = arith.constant 0.000000e+00 : f32
    %9 = vector.broadcast %cst_8 : f32 to vector<16x128xf32>
    %10 = arith.maximumf %8, %9 : vector<16x128xf32>
    %c0_9 = arith.constant 0 : index
    %c0_10 = arith.constant 0 : index
    %11 = vector.load %arg3[%c0_9, %c0_10] : memref<128x128xf32, #tpu.memory_space<vmem>>, vector<128x128xf32>
    %cst_11 = arith.constant dense<0.000000e+00> : vector<16x128xf32>
    %12 = tpu.matmul %10, %11, %cst_11 {dimension_numbers = #tpu.dot_dimension_numbers<[1], [0], [0], [1], [0, 0, 1, 1], [], []>} : vector<16x128xf32>, vector<128x128xf32>, vector<16x128xf32> -> vector<16x128xf32>
    %13 = vector.broadcast %1 : vector<1x128xf32> to vector<16x128xf32>
    %14 = arith.addf %12, %13 : vector<16x128xf32>
    %cst_12 = arith.constant 0.000000e+00 : f32
    %15 = vector.broadcast %cst_12 : f32 to vector<16x128xf32>
    %16 = arith.maximumf %14, %15 : vector<16x128xf32>
    %c0_13 = arith.constant 0 : index
    %c0_14 = arith.constant 0 : index
    %17 = vector.load %arg4[%c0_13, %c0_14] : memref<128x128xf32, #tpu.memory_space<vmem>>, vector<128x128xf32>
    %cst_15 = arith.constant dense<0.000000e+00> : vector<16x128xf32>
    %18 = tpu.matmul %16, %17, %cst_15 {dimension_numbers = #tpu.dot_dimension_numbers<[1], [0], [0], [1], [0, 0, 1, 1], [], []>} : vector<16x128xf32>, vector<128x128xf32>, vector<16x128xf32> -> vector<16x128xf32>
    %19 = vector.broadcast %2 : vector<1x128xf32> to vector<16x128xf32>
    %20 = arith.addf %18, %19 : vector<16x128xf32>
    %cst_16 = arith.constant 0.000000e+00 : f32
    %21 = vector.broadcast %cst_16 : f32 to vector<16x128xf32>
    %22 = arith.maximumf %20, %21 : vector<16x128xf32>
    %c0_17 = arith.constant 0 : index
    %c0_18 = arith.constant 0 : index
    %23 = vector.load %arg5[%c0_17, %c0_18] : memref<128x128xf32, #tpu.memory_space<vmem>>, vector<128x128xf32>
    %cst_19 = arith.constant dense<0.000000e+00> : vector<16x128xf32>
    %24 = tpu.matmul %22, %23, %cst_19 {dimension_numbers = #tpu.dot_dimension_numbers<[1], [0], [0], [1], [0, 0, 1, 1], [], []>} : vector<16x128xf32>, vector<128x128xf32>, vector<16x128xf32> -> vector<16x128xf32>
    %25 = vector.broadcast %3 : vector<1x128xf32> to vector<16x128xf32>
    %26 = arith.addf %24, %25 : vector<16x128xf32>
    %c0_20 = arith.constant 0 : index
    %c0_21 = arith.constant 0 : index
    %27 = vector.load %arg7[%c0_20, %c0_21] : memref<16x128xf32, #tpu.memory_space<vmem>>, vector<16x128xf32>
    tpu.vector_store %arg7[%c0_20, %c0_21], %26 {strides = array<i32>} : memref<16x128xf32, #tpu.memory_space<vmem>>, vector<16x128xf32>,
    return
  }
  func.func @transform_0(%arg0: i32) -> (i32, i32) {
    %c0_i32 = arith.constant 0 : i32
    %c0_i32_0 = arith.constant 0 : i32
    return %arg0, %c0_i32 : i32, i32
  }
  func.func @transform_1(%arg0: i32) -> (i32, i32) {
    %c0_i32 = arith.constant 0 : i32
    %c0_i32_0 = arith.constant 0 : i32
    %c0_i32_1 = arith.constant 0 : i32
    return %c0_i32, %c0_i32_0 : i32, i32
  }
  func.func @transform_2(%arg0: i32) -> (i32, i32) {
    %c0_i32 = arith.constant 0 : i32
    %c0_i32_0 = arith.constant 0 : i32
    %c0_i32_1 = arith.constant 0 : i32
    return %c0_i32, %c0_i32_0 : i32, i32
  }
  func.func @transform_3(%arg0: i32) -> (i32, i32) {
    %c0_i32 = arith.constant 0 : i32
    %c0_i32_0 = arith.constant 0 : i32
    %c0_i32_1 = arith.constant 0 : i32
    return %c0_i32, %c0_i32_0 : i32, i32
  }
  func.func @transform_4(%arg0: i32) -> (i32, i32) {
    %c0_i32 = arith.constant 0 : i32
    %c0_i32_0 = arith.constant 0 : i32
    %c0_i32_1 = arith.constant 0 : i32
    return %c0_i32, %c0_i32_0 : i32, i32
  }
  func.func @transform_5(%arg0: i32) -> (i32, i32) {
    %c0_i32 = arith.constant 0 : i32
    %c0_i32_0 = arith.constant 0 : i32
    %c0_i32_1 = arith.constant 0 : i32
    return %c0_i32, %c0_i32_0 : i32, i32
  }
  func.func @transform_6(%arg0: i32) -> (i32, i32) {
    %c0_i32 = arith.constant 0 : i32
    %c0_i32_0 = arith.constant 0 : i32
    return %arg0, %c0_i32 : i32, i32
  }
}

</mosaic_0001>

<bundles_post_ra>
// kernel: tpu_custom_call.1
= control target key start
LH: loop header
LB: loop body
LE: loop exit
PB: predicated region body
PF: predicated region fallthrough
CT: control target
= control target key end

     0   :  { %11 = vsyncpa [#allocation3], 0  ;;  %s1753_s0 = inlined_call_operand.hbm [shape: bf16[16,1024], index: 0, kind: input, shape index: {}]   ;;  %s1754_s1 = inlined_call_operand.hbm [shape: bf16[1024,128], index: 1, kind: input, shape index: {}]   ;;  %s1755_s2 = inlined_call_operand.hbm [shape: f32[128,128], index: 2, kind: input, shape index: {}]   ;;  %s1756_s3 = inlined_call_operand.hbm [shape: f32[128,128], index: 3, kind: input, shape index: {}]   ;;  %s1757_s4 = inlined_call_operand.hbm [shape: f32[128,128], index: 4, kind: input, shape index: {}]   ;;  %s1758_s5 = inlined_call_operand.vmem [shape: f32[4,128], index: 5, kind: input, shape index: {}]   ;;  %s1759_s6 = inlined_call_operand.hbm [shape: f32[16,128], index: 6, kind: output, shape index: {}]  }
   0x1   :  { %12 = vsyncpa [#allocation6], 0 }
   0x2   :  { %13 = vsyncpa [#allocation9], 0 }
   0x3   :  { %14 = vsyncpa [#allocation4], 0  ;;  %s1664_s21 = smov [#allocation5]  }
   0x4   :  { %s32_s22 = sshll.u32 %s1664_s21, 4  ;;  %s33_s22 = int_to_ptr.vmem [resolvable:$true] %s32_s22 }
   0x5   :  { %s1544_s23 = scalar_lea.vmem %s33_s22, 8192  ;;  %p1549_p1 = scmp.lt.s32.totalorder %s33_s22, %s33_s22 }
   0x6   :  { %p1545_p0 = scmp.ne.s32.totalorder %s33_s22, %s1544_s23  ;;  %p1550_p2 = scmp.lt.s32.totalorder %s1544_s23, %s1544_s23 }
   0x8   :  { %p1551_p3 = por %p1550_p2, %p1549_p1 }
   0xa   :  { %p1552_p4 = pnand %p1551_p3, %p1545_p0 }
   0xc   :  { %1555 = shalt.err (!%p1552_p4)
}
   0xd   :  { %s1665_s24 = smov 64   ;;  %s1666_s25 = smov 4  }
   0xe   :  { %38 = dma.hbm_to_vmem [thread:$0]  %s1754_s1, 8192, %s33_s22, [#allocation6], %s1665_s24, %s1665_s24, %s1666_s25  }
   0xf   :  { %s1667_s28 = smov [#allocation8]   ;;  %s1668_s30 = smov [#allocation2]  }
  0x10   :  { %s56_s29 = sshll.u32 %s1667_s28, 4  ;;  %s20_s7 = sshll.u32 %s1668_s30, 4  ;;  %s57_s29 = int_to_ptr.vmem [resolvable:$true] %s56_s29  ;;  %s21_s7 = int_to_ptr.vmem [resolvable:$true] %s20_s7 }
  0x11   :  { %s1564_s8 = scalar_lea.vmem %s57_s29, 2048  ;;  %p1569_p6 = scmp.lt.s32.totalorder %s57_s29, %s57_s29 }
  0x12   :  { %p1565_p5 = scmp.ne.s32.totalorder %s57_s29, %s1564_s8  ;;  %p1570_p7 = scmp.lt.s32.totalorder %s1564_s8, %s1564_s8 }
  0x14   :  { %p1571_p8 = por %p1570_p7, %p1569_p6 }
  0x16   :  { %p1572_p9 = pnand %p1571_p8, %p1565_p5 }
  0x18   :  { %1575 = shalt.err (!%p1572_p9)
}
  0x19   :  { %s1669_s9 = smov 128   ;;  %s1670_s10 = smov 8  }
  0x1a   :  { %62 = dma.hbm_to_vmem [thread:$0]  %s1756_s3, 2048, %s57_s29, [#allocation9], %s1669_s9, %s1669_s9, %s1670_s10  }
  0x1b   :  { %s1584_s1 = scalar_lea.vmem %s21_s7, 1024  ;;  %p1589_p11 = scmp.lt.s32.totalorder %s21_s7, %s21_s7 }
  0x1c   :  { %p1585_p10 = scmp.ne.s32.totalorder %s21_s7, %s1584_s1  ;;  %p1590_p12 = scmp.lt.s32.totalorder %s1584_s1, %s1584_s1 }
  0x1e   :  { %p1591_p13 = por %p1590_p12, %p1589_p11 }
  0x20   :  { %p1592_p0 = pnand %p1591_p13, %p1585_p10 }
  0x22   :  { %1595 = shalt.err (!%p1592_p0)
}
  0x23   :  { %s1671_s13 = smov 512   ;;  %s1672_s14 = smov 32  }
  0x24   :  { %26 = dma.hbm_to_vmem [thread:$0]  %s1753_s0, 1024, %s21_s7, [#allocation3], %s1671_s13, %s1671_s13, %s1672_s14  }
  0x25   :  { %s1673_s17 = smov [#allocation7]   ;;  %s1674_s19 = smov [#allocation10]  }
  0x26   :  { %s44_s18 = sshll.u32 %s1673_s17, 4  ;;  %s68_s20 = sshll.u32 %s1674_s19, 4  ;;  %s45_s18 = int_to_ptr.vmem [resolvable:$true] %s44_s18  ;;  %s69_s20 = int_to_ptr.vmem [resolvable:$true] %s68_s20 }
  0x27   :  { %s1604_s3 = scalar_lea.vmem %s45_s18, 2048  ;;  %p1609_p2 = scmp.lt.s32.totalorder %s45_s18, %s45_s18 }
  0x28   :  { %p1605_p1 = scmp.ne.s32.totalorder %s45_s18, %s1604_s3  ;;  %p1610_p3 = scmp.lt.s32.totalorder %s1604_s3, %s1604_s3 }
  0x2a   :  { %p1611_p4 = por %p1610_p3, %p1609_p2 }
  0x2c   :  { %p1612_p5 = pnand %p1611_p4, %p1605_p1 }
  0x2e   :  { %1615 = shalt.err (!%p1612_p5)
}
  0x2f   :  { %50 = dma.hbm_to_vmem [thread:$0]  %s1755_s2, 2048, %s45_s18, [#allocation6], %s1669_s9, %s1669_s9, %s1670_s10  }
  0x30   :  { %s1624_s0 = scalar_lea.vmem %s69_s20, 2048  ;;  %p1629_p7 = scmp.lt.s32.totalorder %s69_s20, %s69_s20 }
  0x31   :  { %p1625_p6 = scmp.ne.s32.totalorder %s69_s20, %s1624_s0  ;;  %p1630_p8 = scmp.lt.s32.totalorder %s1624_s0, %s1624_s0 }
  0x33   :  { %p1631_p9 = por %p1630_p8, %p1629_p7 }
  0x35   :  { %p1632_p10 = pnand %p1631_p9, %p1625_p6 }
  0x37   :  { %1635 = shalt.err (!%p1632_p10)
}
  0x38   :  { %74 = dma.hbm_to_vmem [thread:$0]  %s1757_s4, 2048, %s69_s20, [#allocation9], %s1669_s9, %s1669_s9, %s1670_s10  }
  0x39   :  { %1656 = dma.done.wait [#allocation3], 1024  }
  0x3a   :  { %1657 = vsyncadd [#allocation3], 4294966272 }
  0x3b   :  { %1658 = dma.done.wait [#allocation6], 10240  }
  0x3c   :  { %1659 = vsyncadd [#allocation6], 4294957056 }
  0x3d   :  { %1660 = dma.done.wait [#allocation9], 4096  }
  0x3e   :  { %1661 = vsyncadd [#allocation9], 4294963200  ;;  %v1472_v0 = vld [vmem:[#allocation5 + $0x78] sm:$0xff]   ;;  %v1476_v4 = vld [vmem:[#allocation5 + $0x70] sm:$0xff]   ;;  %s1675_s7 = smov [#allocation11]  }
  0x3f   :  { %v1473_v1 = vld [vmem:[#allocation5 + $0xf8] sm:$0xff]   ;;  %1213 = vmatprep.subr.bf16.mxu0 %v1472_v0  ;;  %v1477_v5 = vld [vmem:[#allocation5 + $0xf0] sm:$0xff]   ;;  %v1480_v8 = vld [vmem:[#allocation5 + $0x68] sm:$0xff]   ;;  %s1123_s8 = sshll.u32 %s1675_s7, 4  ;;  %s1124_s8 = int_to_ptr.vmem [resolvable:$true] %s1123_s8 }
  0x40   :  { %v1474_v2 = vld [vmem:[#allocation5 + $0x38] sm:$0xff]   ;;  %1235 = vmatprep.subr.bf16.mxu1 %v1473_v1  ;;  %v1478_v6 = vld [vmem:[#allocation5 + $0x30] sm:$0xff]   ;;  %v1481_v9 = vld [vmem:[#allocation5 + $0xe8] sm:$0xff]   ;;  %s1636_s11 = scalar_lea.vmem %s1124_s8, 256  ;;  %p1641_p12 = scmp.lt.s32.totalorder %s1124_s8, %s1124_s8 }
  0x41   :  { %v1475_v3 = vld [vmem:[#allocation5 + $0xb8] sm:$0xff]   ;;  %1214 = vmatpush3.bf16.msra.mxu0 %v1474_v2  ;;  %v1479_v7 = vld [vmem:[#allocation5 + $0xb0] sm:$0xff]   ;;  %v1482_v10 = vld [vmem:[#allocation5 + $0x28] sm:$0xff]   ;;  %p1637_p11 = scmp.ne.s32.totalorder %s1124_s8, %s1636_s11  ;;  %p1642_p13 = scmp.lt.s32.totalorder %s1636_s11, %s1636_s11 }
  0x42   :  { %1236 = vmatpush3.bf16.msra.mxu1 %v1475_v3  ;;  %1215 = vmatprep.subr.bf16.mxu0 %v1476_v4  ;;  %v1483_v11 = vld [vmem:[#allocation5 + $0xa8] sm:$0xff]   ;;  %v1484_v12 = vld [vmem:[#allocation5 + $0x60] sm:$0xff]   ;;  %v1488_v16 = vld [vmem:[#allocation5 + $0x58] sm:$0xff]  }
  0x43   :  { %1237 = vmatprep.subr.bf16.mxu1 %v1477_v5  ;;  %v1485_v13 = vld [vmem:[#allocation5 + $0xe0] sm:$0xff]   ;;  %v1489_v17 = vld [vmem:[#allocation5 + $0xd8] sm:$0xff]   ;;  %v1492_v20 = vld [vmem:[#allocation5 + $0x50] sm:$0xff]   ;;  %p1643_p0 = por %p1642_p13, %p1641_p12 }
  0x44   :  { %v1486_v14 = vld [vmem:[#allocation5 + $0x20] sm:$0xff]   ;;  %v1490_v18 = vld [vmem:[#allocation5 + $0x18] sm:$0xff]   ;;  %v1493_v21 = vld [vmem:[#allocation5 + $0xd0] sm:$0xff]  }
  0x45   :  { %1216 = vmatpush3.bf16.msra.mxu0 %v1478_v6  ;;  %v1487_v15 = vld [vmem:[#allocation5 + $0xa0] sm:$0xff]   ;;  %v1491_v19 = vld [vmem:[#allocation5 + $0x98] sm:$0xff]   ;;  %v1494_v22 = vld [vmem:[#allocation5 + $0x10] sm:$0xff]   ;;  %p1644_p1 = pnand %p1643_p0, %p1637_p11 }
  0x46   :  { %1238 = vmatpush3.bf16.msra.mxu1 %v1479_v7  ;;  %1217 = vmatprep.subr.bf16.mxu0 %v1480_v8  ;;  %v1495_v23 = vld [vmem:[#allocation5 + $0x90] sm:$0xff]   ;;  %v1496_v24 = vld [vmem:[#allocation5 + $0x48] sm:$0xff]   ;;  %v1500_v28 = vld [vmem:[#allocation5 + $0x40] sm:$0xff]  }
  0x47   :  { %1239 = vmatprep.subr.bf16.mxu1 %v1481_v9  ;;  %v1497_v25 = vld [vmem:[#allocation5 + $0xc8] sm:$0xff]   ;;  %v1501_v29 = vld [vmem:[#allocation5 + $0xc0] sm:$0xff]   ;;  %v1504_v40 = vld [vmem:[#allocation5 + $0x178] sm:$0xff]  }
  0x48   :  { %v1498_v26 = vld [vmem:[#allocation5 + $0x8] sm:$0xff]   ;;  %v1502_v30 = vld [vmem:[#allocation5] sm:$0xff]   ;;  %v1505_v41 = vld [vmem:[#allocation5 + $0x1f8] sm:$0xff]  }
  0x49   :  { %1218 = vmatpush3.bf16.msra.mxu0 %v1482_v10  ;;  %v1499_v27 = vld [vmem:[#allocation5 + $0x88] sm:$0xff]   ;;  %v1503_v31 = vld [vmem:[#allocation5 + $0x80] sm:$0xff]   ;;  %v1506_v42 = vld [vmem:[#allocation5 + $0x138] sm:$0xff]  }
  0x4a   :  { %1240 = vmatpush3.bf16.msra.mxu1 %v1483_v11  ;;  %1219 = vmatprep.subr.bf16.mxu0 %v1484_v12  ;;  %v97_v32 = vld [vmem:[#allocation2] sm:$0xff]  ;;  %v98_v34 = vld [vmem:[#allocation2 + $0x8] sm:$0xff]  ;;  %v1507_v43 = vld [vmem:[#allocation5 + $0x1b8] sm:$0xff]  }
  0x4b   :  { %1241 = vmatprep.subr.bf16.mxu1 %v1485_v13  ;;  %v101_v33 = vld [vmem:[#allocation2 + $0x20] sm:$0xff]  ;;  %v102_v37 = vld [vmem:[#allocation2 + $0x28] sm:$0xff]  ;;  %v1508_v44 = vld [vmem:[#allocation5 + $0x170] sm:$0xff]  }
  0x4c   :  { %v1138_v35 = vcombine.low %v97_v32, %v101_v33  ;;  %v1139_v36 = vcombine.high %v97_v32, %v101_v33  ;;  %v1140_v38 = vcombine.low %v98_v34, %v102_v37  ;;  %v1141_v39 = vcombine.high %v98_v34, %v102_v37  ;;  %v1509_v45 = vld [vmem:[#allocation5 + $0x1f0] sm:$0xff]   ;;  %v1512_v48 = vld [vmem:[#allocation5 + $0x168] sm:$0xff]   ;;  %v1516_v52 = vld [vmem:[#allocation5 + $0x160] sm:$0xff]  }
  0x4d   :  { %1220 = vmatpush3.bf16.msra.mxu0 %v1486_v14  ;;  %v1510_v46 = vld [vmem:[#allocation5 + $0x130] sm:$0xff]   ;;  %v1513_v49 = vld [vmem:[#allocation5 + $0x1e8] sm:$0xff]   ;;  %v1517_v53 = vld [vmem:[#allocation5 + $0x1e0] sm:$0xff]  }
  0x4e   :  { %1242 = vmatpush3.bf16.msra.mxu1 %v1487_v15  ;;  %1221 = vmatprep.subr.bf16.mxu0 %v1488_v16  ;;  %v1511_v47 = vld [vmem:[#allocation5 + $0x1b0] sm:$0xff]   ;;  %v1514_v50 = vld [vmem:[#allocation5 + $0x128] sm:$0xff]   ;;  %v1518_v54 = vld [vmem:[#allocation5 + $0x120] sm:$0xff]  }
  0x4f   :  { %1243 = vmatprep.subr.bf16.mxu1 %v1489_v17  ;;  %693 = vmatprep.mubr.bf16.mxu0 %v1139_v36  ;;  %v1515_v51 = vld [vmem:[#allocation5 + $0x1a8] sm:$0xff]   ;;  %v1519_v55 = vld [vmem:[#allocation5 + $0x1a0] sm:$0xff]   ;;  %v1520_v56 = vld [vmem:[#allocation5 + $0x158] sm:$0xff]  }
  0x50   :  { %734 = vmatprep.mubr.bf16.mxu1 %v1141_v39  ;;  %v1521_v57 = vld [vmem:[#allocation5 + $0x1d8] sm:$0xff]   ;;  %v1524_v60 = vld [vmem:[#allocation5 + $0x150] sm:$0xff]   ;;  %v1528_v0 = vld [vmem:[#allocation5 + $0x148] sm:$0xff]  }
  0x51   :  { %1222 = vmatpush3.bf16.msra.mxu0 %v1490_v18  ;;  %v1522_v58 = vld [vmem:[#allocation5 + $0x118] sm:$0xff]   ;;  %v1525_v61 = vld [vmem:[#allocation5 + $0x1d0] sm:$0xff]   ;;  %v1529_v1 = vld [vmem:[#allocation5 + $0x1c8] sm:$0xff]  }
  0x52   :  { %1244 = vmatpush3.bf16.msra.mxu1 %v1491_v19  ;;  %1223 = vmatprep.subr.bf16.mxu0 %v1492_v20  ;;  %v1523_v59 = vld [vmem:[#allocation5 + $0x198] sm:$0xff]   ;;  %v1526_v62 = vld [vmem:[#allocation5 + $0x110] sm:$0xff]   ;;  %v1530_v2 = vld [vmem:[#allocation5 + $0x108] sm:$0xff]  }
  0x53   :  { %1245 = vmatprep.subr.bf16.mxu1 %v1493_v21  ;;  %v1527_v63 = vld [vmem:[#allocation5 + $0x190] sm:$0xff]   ;;  %v1531_v3 = vld [vmem:[#allocation5 + $0x188] sm:$0xff]   ;;  %v1532_v4 = vld [vmem:[#allocation5 + $0x140] sm:$0xff]  }
  0x54   :  { %v1533_v5 = vld [vmem:[#allocation5 + $0x1c0] sm:$0xff]   ;;  %v99_v8 = vld [vmem:[#allocation2 + $0x10] sm:$0xff]  ;;  %v100_v12 = vld [vmem:[#allocation2 + $0x18] sm:$0xff] }
  0x55   :  { %1224 = vmatpush3.bf16.msra.mxu0 %v1494_v22  ;;  %v1534_v6 = vld [vmem:[#allocation5 + $0x100] sm:$0xff]   ;;  %v103_v9 = vld [vmem:[#allocation2 + $0x30] sm:$0xff]  ;;  %v104_v13 = vld [vmem:[#allocation2 + $0x38] sm:$0xff] }
  0x56   :  { %1246 = vmatpush3.bf16.msra.mxu1 %v1495_v23  ;;  %1225 = vmatprep.subr.bf16.mxu0 %v1496_v24  ;;  %v1535_v7 = vld [vmem:[#allocation5 + $0x180] sm:$0xff]   ;;  %v1142_v10 = vcombine.low %v99_v8, %v103_v9  ;;  %v1143_v11 = vcombine.high %v99_v8, %v103_v9  ;;  %v1144_v14 = vcombine.low %v100_v12, %v104_v13  ;;  %v842_v16 = vld [vmem:[#allocation7 + $0x78] sm:$0xff]  ;;  %v841_v17 = vld [vmem:[#allocation7 + $0x70] sm:$0xff] }
  0x57   :  { %1247 = vmatprep.subr.bf16.mxu1 %v1497_v25  ;;  %v1145_v15 = vcombine.high %v100_v12, %v104_v13  ;;  %v840_v18 = vld [vmem:[#allocation7 + $0x68] sm:$0xff]  ;;  %v839_v19 = vld [vmem:[#allocation7 + $0x60] sm:$0xff]  ;;  %v838_v20 = vld [vmem:[#allocation7 + $0x58] sm:$0xff] }
  0x58   :  { %v837_v21 = vld [vmem:[#allocation7 + $0x50] sm:$0xff]  ;;  %v836_v22 = vld [vmem:[#allocation7 + $0x48] sm:$0xff]  ;;  %v835_v23 = vld [vmem:[#allocation7 + $0x40] sm:$0xff] }
  0x59   :  { %1226 = vmatpush3.bf16.msra.mxu0 %v1498_v26  ;;  %v834_v24 = vld [vmem:[#allocation7 + $0x38] sm:$0xff]  ;;  %v833_v25 = vld [vmem:[#allocation7 + $0x30] sm:$0xff]  ;;  %v832_v26 = vld [vmem:[#allocation7 + $0x28] sm:$0xff] }
  0x5a   :  { %1248 = vmatpush3.bf16.msra.mxu1 %v1499_v27  ;;  %1227 = vmatprep.subr.bf16.mxu0 %v1500_v28  ;;  %v831_v27 = vld [vmem:[#allocation7 + $0x20] sm:$0xff]  ;;  %v830_v28 = vld [vmem:[#allocation7 + $0x18] sm:$0xff]  ;;  %v938_v33 = vld [vmem:[#allocation8 + $0x70] sm:$0xff] }
  0x5b   :  { %1249 = vmatprep.subr.bf16.mxu1 %v1501_v29  ;;  %v829_v29 = vld [vmem:[#allocation7 + $0x10] sm:$0xff]  ;;  %v939_v32 = vld [vmem:[#allocation8 + $0x78] sm:$0xff]  ;;  %v937_v34 = vld [vmem:[#allocation8 + $0x68] sm:$0xff] }
  0x5c   :  { %v935_v36 = vld [vmem:[#allocation8 + $0x58] sm:$0xff]  ;;  %v934_v37 = vld [vmem:[#allocation8 + $0x50] sm:$0xff]  ;;  %v932_v39 = vld [vmem:[#allocation8 + $0x40] sm:$0xff] }
  0x5d   :  { %1228 = vmatpush3.bf16.msra.mxu0 %v1502_v30  ;;  %v828_v30 = vld [vmem:[#allocation7 + $0x8] sm:$0xff] }
  0x5e   :  { %1250 = vmatpush3.bf16.msra.mxu1 %v1503_v31  ;;  %1257 = vmatprep.subr.bf16.mxu0 %v1504_v40  ;;  %v827_v31 = vld [vmem:[#allocation7] sm:$0xff]  ;;  %v931_v40 = vld [vmem:[#allocation8 + $0x38] sm:$0xff] }
  0x5f   :  { %1279 = vmatprep.subr.bf16.mxu1 %v1505_v41  ;;  %v930_v41 = vld [vmem:[#allocation8 + $0x30] sm:$0xff] }
  0x60   :  { %694 = vmatmul.mubr.bf16.vlgmr.msra.gmra.mxu0 %v1138_v35  ;;  %v936_v35 = vld [vmem:[#allocation8 + $0x60] sm:$0xff] }
  0x61   :  { %735 = vmatmul.mubr.bf16.vlgmr.msra.gmra.mxu1 %v1140_v38  ;;  %1258 = vmatpush3.bf16.msra.mxu0 %v1506_v42  ;;  %v933_v38 = vld [vmem:[#allocation8 + $0x48] sm:$0xff] }
  0x62   :  { %1280 = vmatpush3.bf16.msra.mxu1 %v1507_v43  ;;  %1259 = vmatprep.subr.bf16.mxu0 %v1508_v44  ;;  %v929_v42 = vld [vmem:[#allocation8 + $0x28] sm:$0xff]  ;;  %v928_v43 = vld [vmem:[#allocation8 + $0x20] sm:$0xff] }
  0x63   :  { %1281 = vmatprep.subr.bf16.mxu1 %v1509_v45  ;;  %775 = vmatprep.mubr.bf16.mxu0 %v1143_v11 }
  0x64   :  { %816 = vmatprep.mubr.bf16.mxu1 %v1145_v15  ;;  %v927_v15 = vld [vmem:[#allocation8 + $0x18] sm:$0xff] }
  0x65   :  { %1260 = vmatpush3.bf16.msra.mxu0 %v1510_v46 }
  0x66   :  { %1282 = vmatpush3.bf16.msra.mxu1 %v1511_v47  ;;  %1261 = vmatprep.subr.bf16.mxu0 %v1512_v48 }
  0x67   :  { %1283 = vmatprep.subr.bf16.mxu1 %v1513_v49 }
  0x69   :  { %1262 = vmatpush3.bf16.msra.mxu0 %v1514_v50 }
  0x6a   :  { %1284 = vmatpush3.bf16.msra.mxu1 %v1515_v51  ;;  %1263 = vmatprep.subr.bf16.mxu0 %v1516_v52  ;;  %v1137_v51 = vld [vmem:[%s1758_s5] ss:$0 sm:$0xff] }
  0x6b   :  { %1285 = vmatprep.subr.bf16.mxu1 %v1517_v53 }
  0x6d   :  { %1264 = vmatpush3.bf16.msra.mxu0 %v1518_v54 }
  0x6e   :  { %1286 = vmatpush3.bf16.msra.mxu1 %v1519_v55  ;;  %1265 = vmatprep.subr.bf16.mxu0 %v1520_v56 }
  0x6f   :  { %1287 = vmatprep.subr.bf16.mxu1 %v1521_v57 }
  0x71   :  { %1266 = vmatpush3.bf16.msra.mxu0 %v1522_v58 }
  0x72   :  { %1288 = vmatpush3.bf16.msra.mxu1 %v1523_v59  ;;  %1267 = vmatprep.subr.bf16.mxu0 %v1524_v60 }
  0x73   :  { %1289 = vmatprep.subr.bf16.mxu1 %v1525_v61 }
  0x75   :  { %1268 = vmatpush3.bf16.msra.mxu0 %v1526_v62 }
  0x76   :  { %1290 = vmatpush3.bf16.msra.mxu1 %v1527_v63  ;;  %1269 = vmatprep.subr.bf16.mxu0 %v1528_v0 }
  0x77   :  { %1291 = vmatprep.subr.bf16.mxu1 %v1529_v1 }
  0x79   :  { %1270 = vmatpush3.bf16.msra.mxu0 %v1530_v2 }
  0x7a   :  { %1292 = vmatpush3.bf16.msra.mxu1 %v1531_v3  ;;  %1271 = vmatprep.subr.bf16.mxu0 %v1532_v4 }
  0x7b   :  { %1293 = vmatprep.subr.bf16.mxu1 %v1533_v5 }
  0x7d   :  { %1272 = vmatpush3.bf16.msra.mxu0 %v1534_v6 }
  0x7e   :  { %1294 = vmatpush3.bf16.msra.mxu1 %v1535_v7  ;;  %1355 = vmatprep.subr.mxu0 %v842_v16 }
  0x7f   :  { %1390 = vmatprep.subr.mxu1 %v939_v32 }
  0x80   :  { %776 = vmatmul.mubr.bf16.vlgmr.msra.gmra.mxu0 %v1142_v10 }
  0x81   :  { %817 = vmatmul.mubr.bf16.vlgmr.msra.gmra.mxu1 %v1144_v14  ;;  %1356 = vmatpush3.msra.mxu0 %v842_v16  ;;  %v926_v16 = vld [vmem:[#allocation8 + $0x10] sm:$0xff] }
  0x82   :  { %1357 = vmatprep.subr.mxu0 %v841_v17  ;;  %1391 = vmatpush3.msra.mxu1 %v939_v32 }
  0x83   :  { %1358 = vmatpush3.msra.mxu0 %v841_v17  ;;  %1392 = vmatprep.subr.mxu1 %v938_v33  ;;  %v925_v17 = vld [vmem:[#allocation8 + $0x8] sm:$0xff] }
  0x84   :  { %1359 = vmatprep.subr.mxu0 %v840_v18  ;;  %1393 = vmatpush3.msra.mxu1 %v938_v33 }
  0x85   :  { %1360 = vmatpush3.msra.mxu0 %v840_v18  ;;  %1394 = vmatprep.subr.mxu1 %v937_v34  ;;  %v924_v18 = vld [vmem:[#allocation8] sm:$0xff] }
  0x86   :  { %1361 = vmatprep.subr.mxu0 %v839_v19  ;;  %1395 = vmatpush3.msra.mxu1 %v937_v34 }
  0x87   :  { %1362 = vmatpush3.msra.mxu0 %v839_v19  ;;  %1396 = vmatprep.subr.mxu1 %v936_v35  ;;  %v1036_v19 = vld [vmem:[#allocation10 + $0x78] sm:$0xff] }
  0x88   :  { %1363 = vmatprep.subr.mxu0 %v838_v20  ;;  %1397 = vmatpush3.msra.mxu1 %v936_v35 }
  0x89   :  { %1364 = vmatpush3.msra.mxu0 %v838_v20  ;;  %1398 = vmatprep.subr.mxu1 %v935_v36  ;;  %v1035_v20 = vld [vmem:[#allocation10 + $0x70] sm:$0xff] }
  0x8a   :  { %1365 = vmatprep.subr.mxu0 %v837_v21  ;;  %1399 = vmatpush3.msra.mxu1 %v935_v36 }
  0x8b   :  { %1366 = vmatpush3.msra.mxu0 %v837_v21  ;;  %1400 = vmatprep.subr.mxu1 %v934_v37  ;;  %v1034_v21 = vld [vmem:[#allocation10 + $0x68] sm:$0xff] }
  0x8c   :  { %1367 = vmatprep.subr.mxu0 %v836_v22  ;;  %1401 = vmatpush3.msra.mxu1 %v934_v37 }
  0x8d   :  { %1368 = vmatpush3.msra.mxu0 %v836_v22  ;;  %1402 = vmatprep.subr.mxu1 %v933_v38  ;;  %v1033_v22 = vld [vmem:[#allocation10 + $0x60] sm:$0xff] }
  0x8e   :  { %1369 = vmatprep.subr.mxu0 %v835_v23  ;;  %1403 = vmatpush3.msra.mxu1 %v933_v38  ;;  %v1024_v38 = vld [vmem:[#allocation10 + $0x18] sm:$0xff] }
  0x8f   :  { %1370 = vmatpush3.msra.mxu0 %v835_v23  ;;  %1404 = vmatprep.subr.mxu1 %v932_v39  ;;  %v1032_v23 = vld [vmem:[#allocation10 + $0x58] sm:$0xff] }
  0x90   :  { %1371 = vmatprep.subr.mxu0 %v834_v24  ;;  %1405 = vmatpush3.msra.mxu1 %v932_v39  ;;  %v1023_v39 = vld [vmem:[#allocation10 + $0x10] sm:$0xff] }
  0x91   :  { %1372 = vmatpush3.msra.mxu0 %v834_v24  ;;  %1406 = vmatprep.subr.mxu1 %v931_v40  ;;  %v1031_v24 = vld [vmem:[#allocation10 + $0x50] sm:$0xff] }
  0x92   :  { %1373 = vmatprep.subr.mxu0 %v833_v25  ;;  %1407 = vmatpush3.msra.mxu1 %v931_v40  ;;  %v1022_v40 = vld [vmem:[#allocation10 + $0x8] sm:$0xff] }
  0x93   :  { %1374 = vmatpush3.msra.mxu0 %v833_v25  ;;  %1408 = vmatprep.subr.mxu1 %v930_v41  ;;  %v1030_v25 = vld [vmem:[#allocation10 + $0x48] sm:$0xff] }
  0x94   :  { %1375 = vmatprep.subr.mxu0 %v832_v26  ;;  %1409 = vmatpush3.msra.mxu1 %v930_v41  ;;  %v1021_v41 = vld [vmem:[#allocation10] sm:$0xff] }
  0x95   :  { %1376 = vmatpush3.msra.mxu0 %v832_v26  ;;  %1410 = vmatprep.subr.mxu1 %v929_v42  ;;  %v1029_v26 = vld [vmem:[#allocation10 + $0x40] sm:$0xff] }
  0x96   :  { %1377 = vmatprep.subr.mxu0 %v831_v27  ;;  %1411 = vmatpush3.msra.mxu1 %v929_v42  ;;  %v1211_v42 = vld [vmem:[%s1758_s5 + $0x2] ss:$0 sm:$0xff] }
  0x97   :  { %1378 = vmatpush3.msra.mxu0 %v831_v27  ;;  %1412 = vmatprep.subr.mxu1 %v928_v43  ;;  %v1028_v27 = vld [vmem:[#allocation10 + $0x38] sm:$0xff] }
  0x98   :  { %1379 = vmatprep.subr.mxu0 %v830_v28  ;;  %1413 = vmatpush3.msra.mxu1 %v928_v43 }
  0x99   :  { %1380 = vmatpush3.msra.mxu0 %v830_v28  ;;  %1414 = vmatprep.subr.mxu1 %v927_v15  ;;  %v1027_v28 = vld [vmem:[#allocation10 + $0x30] sm:$0xff] }
  0x9a   :  { %1381 = vmatprep.subr.mxu0 %v829_v29  ;;  %1415 = vmatpush3.msra.mxu1 %v927_v15 }
  0x9b   :  { %1382 = vmatpush3.msra.mxu0 %v829_v29  ;;  %1416 = vmatprep.subr.mxu1 %v926_v16  ;;  %v1026_v29 = vld [vmem:[#allocation10 + $0x28] sm:$0xff] }
  0x9c   :  { %1383 = vmatprep.subr.mxu0 %v828_v30  ;;  %1417 = vmatpush3.msra.mxu1 %v926_v16 }
  0x9d   :  { %1384 = vmatpush3.msra.mxu0 %v828_v30  ;;  %1418 = vmatprep.subr.mxu1 %v925_v17  ;;  %v1025_v30 = vld [vmem:[#allocation10 + $0x20] sm:$0xff] }
  0x9e   :  { %1385 = vmatprep.subr.mxu0 %v827_v31  ;;  %1419 = vmatpush3.msra.mxu1 %v925_v17 }
  0x9f   :  { %1386 = vmatpush3.msra.mxu0 %v827_v31  ;;  %1420 = vmatprep.subr.mxu1 %v924_v18  ;;  %v1210_v31 = vld [vmem:[%s1758_s5 + $0x1] ss:$0 sm:$0xff] }
  0xa0   :  { %1421 = vmatpush3.msra.mxu1 %v924_v18  ;;  %1425 = vmatprep.subr.mxu0 %v1036_v19 }
 0x120   :  { %v1229_v44 = vpop.f32.mrf.mxu0 }
 0x121   :  { %v1251_v45 = vpop.f32.mrf.mxu1 }
 0x122   :  { %v1230_v46 = vpop.f32.mrf.mxu0 }
 0x123   :  { %v1252_v47 = vpop.f32.mrf.mxu1  ;;  %v1231_v49 = vadd.f32 %v1230_v46, %v1229_v44 }
 0x124   :  { %v1232_v48 = vpop.f32.mrf.mxu0  ;;  %v1253_v54 = vadd.f32 %v1252_v47, %v1251_v45 }
 0x125   :  { %v1254_v50 = vpop.f32.mrf.mxu1  ;;  %v696_v53 = vadd.f32 %v1231_v49, %v1137_v51  ;;  %v1212_v49 = vld [vmem:[%s1758_s5 + $0x3] ss:$0 sm:$0xff] }
 0x126   :  { %v1233_v52 = vpop.f32.mrf.mxu0 }
 0x127   :  { %v1234_v55 = vadd.f32 %v1233_v52, %v1232_v48  ;;  %v1255_v56 = vpop.f32.mrf.mxu1  ;;  %v737_v60 = vadd.f32 %v1253_v54, %v696_v53 }
 0x128   :  { %v1256_v1 = vadd.f32 %v1255_v56, %v1254_v50 }
 0x129   :  { %v699_v61 = vadd.f32 %v1234_v55, %v1137_v51 }
 0x12b   :  { %v740_v6 = vadd.f32 %v1256_v1, %v699_v61 }
 0x140   :  { %v1273_v57 = vpop.f32.mrf.mxu0 }
 0x141   :  { %v1295_v58 = vpop.f32.mrf.mxu1 }
 0x142   :  { %v1274_v59 = vpop.f32.mrf.mxu0 }
 0x143   :  { %v1275_v62 = vadd.f32 %v1274_v59, %v1273_v57  ;;  %v1296_v63 = vpop.f32.mrf.mxu1 }
 0x144   :  { %v1276_v0 = vpop.f32.mrf.mxu0  ;;  %v1297_v3 = vadd.f32 %v1296_v63, %v1295_v58 }
 0x145   :  { %v778_v2 = vadd.f32 %v1275_v62, %v737_v60  ;;  %v1298_v4 = vpop.f32.mrf.mxu1 }
 0x146   :  { %v1277_v5 = vpop.f32.mrf.mxu0 }
 0x147   :  { %v819_v7 = vadd.f32 %v1297_v3, %v778_v2  ;;  %v1278_v8 = vadd.f32 %v1277_v5, %v1276_v0  ;;  %v1299_v9 = vpop.f32.mrf.mxu1 }
 0x148   :  { %v1300_v12 = vadd.f32 %v1299_v9, %v1298_v4 }
 0x149   :  { %v825_v10 = vmax.f32 %v819_v7, 0.0  ;;  %v781_v11 = vadd.f32 %v1278_v8, %v740_v6 }
 0x14b   :  { %v822_v13 = vadd.f32 %v1300_v12, %v781_v11  ;;  %1387 = vmatprep.mubr.f32.mxu0 %v825_v10 }
 0x14d   :  { %v826_v14 = vmax.f32 %v822_v13, 0.0 }
 0x14f   :  { %1388 = vmatmul.mubr.f32.vlgmr.msra.gmra.mxu0 %v826_v14 }
 0x150   :  { %1426 = vmatpush3.msra.mxu0 %v1036_v19 }
 0x151   :  { %1427 = vmatprep.subr.mxu0 %v1035_v20 }
 0x152   :  { %1428 = vmatpush3.msra.mxu0 %v1035_v20 }
 0x153   :  { %1429 = vmatprep.subr.mxu0 %v1034_v21 }
 0x154   :  { %1430 = vmatpush3.msra.mxu0 %v1034_v21 }
 0x155   :  { %1431 = vmatprep.subr.mxu0 %v1033_v22 }
 0x156   :  { %1432 = vmatpush3.msra.mxu0 %v1033_v22 }
 0x157   :  { %1433 = vmatprep.subr.mxu0 %v1032_v23 }
 0x158   :  { %1434 = vmatpush3.msra.mxu0 %v1032_v23 }
 0x159   :  { %1435 = vmatprep.subr.mxu0 %v1031_v24 }
 0x15a   :  { %1436 = vmatpush3.msra.mxu0 %v1031_v24 }
 0x15b   :  { %1437 = vmatprep.subr.mxu0 %v1030_v25 }
 0x15c   :  { %1438 = vmatpush3.msra.mxu0 %v1030_v25 }
 0x15d   :  { %1439 = vmatprep.subr.mxu0 %v1029_v26 }
 0x15e   :  { %1440 = vmatpush3.msra.mxu0 %v1029_v26 }
 0x15f   :  { %1441 = vmatprep.subr.mxu0 %v1028_v27 }
 0x160   :  { %1442 = vmatpush3.msra.mxu0 %v1028_v27 }
 0x161   :  { %1443 = vmatprep.subr.mxu0 %v1027_v28 }
 0x162   :  { %1444 = vmatpush3.msra.mxu0 %v1027_v28 }
 0x163   :  { %1445 = vmatprep.subr.mxu0 %v1026_v29 }
 0x164   :  { %1446 = vmatpush3.msra.mxu0 %v1026_v29 }
 0x165   :  { %1447 = vmatprep.subr.mxu0 %v1025_v30 }
 0x166   :  { %1448 = vmatpush3.msra.mxu0 %v1025_v30 }
 0x167   :  { %1449 = vmatprep.subr.mxu0 %v1024_v38 }
 0x168   :  { %1450 = vmatpush3.msra.mxu0 %v1024_v38 }
 0x169   :  { %1451 = vmatprep.subr.mxu0 %v1023_v39 }
 0x16a   :  { %1452 = vmatpush3.msra.mxu0 %v1023_v39 }
 0x16b   :  { %1453 = vmatprep.subr.mxu0 %v1022_v40 }
 0x16c   :  { %1454 = vmatpush3.msra.mxu0 %v1022_v40 }
 0x16d   :  { %1455 = vmatprep.subr.mxu0 %v1021_v41 }
 0x16e   :  { %1456 = vmatpush3.msra.mxu0 %v1021_v41 }
 0x20f   :  { %v1389_v32 = vpop.f32.mrf.mxu0 }
 0x210   :  { %v919_v33 = vadd.f32 %v1389_v32, %v1210_v31 }
 0x211   :  { %v913_v34 = vpop.f32.mrf.mxu0 }
 0x212   :  { %v914_v35 = vadd.f32 %v1210_v31, %v913_v34  ;;  %v923_v37 = vmax.f32 %v919_v33, 0.0 }
 0x214   :  { %v922_v36 = vmax.f32 %v914_v35, 0.0 }
 0x216   :  { %1422 = vmatprep.mubr.f32.mxu1 %v922_v36 }
 0x217   :  { %1423 = vmatmul.mubr.f32.vlgmr.msra.gmra.mxu1 %v923_v37 }
 0x2d7   :  { %v1424_v43 = vpop.f32.mrf.mxu1 }
 0x2d8   :  { %v1016_v44 = vadd.f32 %v1424_v43, %v1211_v42 }
 0x2d9   :  { %v1010_v45 = vpop.f32.mrf.mxu1 }
 0x2da   :  { %v1011_v46 = vadd.f32 %v1211_v42, %v1010_v45  ;;  %v1020_v48 = vmax.f32 %v1016_v44, 0.0 }
 0x2dc   :  { %v1019_v47 = vmax.f32 %v1011_v46, 0.0 }
 0x2de   :  { %1457 = vmatprep.mubr.f32.mxu0 %v1019_v47 }
 0x2df   :  { %1458 = vmatmul.mubr.f32.vlgmr.msra.gmra.mxu0 %v1020_v48 }
 0x39f   :  { %v1459_v50 = vpop.f32.mrf.mxu0 }
 0x3a0   :  { %v1113_v51 = vadd.f32 %v1459_v50, %v1212_v49 }
 0x3a1   :  { %v1107_v52 = vpop.f32.mrf.mxu0 }
 0x3a2   :  { %1117 = vst [vmem:[#allocation11 + $0x8] sm:$0xff] %v1113_v51  ;;  %v1108_v53 = vadd.f32 %v1212_v49, %v1107_v52 }
 0x3a4   :  { %1116 = vst [vmem:[#allocation11] sm:$0xff] %v1108_v53 }
 0x3a5   :  { %1647 = shalt.err (!%p1644_p1)
}
 0x3a6   :  { %1129 = dma.vmem_to_hbm [thread:$0]  %s1124_s8, 256, %s1759_s6, [#allocation4], %s1669_s9, %s1669_s9, %s1670_s10  }
 0x3a7   :  { %1662 = dma.done.wait [#allocation4], 256  }
 0x3a8   :  { %1663 = vsyncadd [#allocation4], 4294967040 }
 0x3a9   :  { %1133 = vsyncpa [#allocation3], 1 }
 0x3aa   :  { %1134 = vsyncpa [#allocation6], 1 }
 0x3ab   :  { %1135 = vsyncpa [#allocation9], 1 }
 0x3ac   :  { %1136 = vsyncpa [#allocation4], 1 }

</bundles_post_ra>
